<compile_context>
chip_gen: v7x
topology: tpu7x:2x2x1
jax: 0.10.0
libtpu: 0.0.40
codegen_flags: <defaults>
</compile_context>

<pallas_src>
import functools

import jax
import jax.numpy as jnp
from jax.experimental import pallas as pl
from jax.experimental.pallas import tpu as pltpu

LANES = 128
SUBLANES = 8
MAX_TILE_ROWS = 4096          # (4096, 128) f32 block = 2 MiB per input buffer
NUM_SPLITS = 2                # leading "parallel" axis (one slice per TC on v7x)
VMEM_LIMIT_BYTES = 40 * 1024 * 1024


def _round_up(a, b):
    return -(-a // b) * b


def _bce_sum_kernel(x_ref, t_ref, out_ref, acc_ref, *,
                    n_valid, tile_rows, tiles_per_split):
    """Per-split sum of elementwise BCE-with-logits losses.

    acc_ref: (8, 128) f32 VMEM accumulator (per-lane/sublane partial sums).
    out_ref: (1, 1) f32 SMEM scalar, one element per parallel split, written
             once on that split's last grid step.
    """
    c = pl.program_id(0)          # parallel split (TensorCore on v7x)
    i = pl.program_id(1)          # sequential reduction over this split's tiles
    nsteps = pl.num_programs(1)

    @pl.when(i == 0)
    def _():
        acc_ref[...] = jnp.zeros_like(acc_ref)

    x = x_ref[...].astype(jnp.float32)
    t = t_ref[...].astype(jnp.float32)

    # Numerically stable BCE with logits (matches torch.nn.BCEWithLogitsLoss):
    #   loss = max(x, 0) - x*t + log1p(exp(-|x|))
    # TODO(synk): on v6e/v7x with bf16 inputs the EUP (exp + log1p) becomes the
    # critical unit; a bf16 softplus would ~halve it at ~2^-8 relative error.
    elem = jnp.maximum(x, 0.0) - x * t + jnp.log1p(jnp.exp(-jnp.abs(x)))

    tile_elems = tile_rows * LANES
    tile_idx = c * tiles_per_split + i          # *unclamped* global tile index
    tile_start = tile_idx * tile_elems
    needs_mask = tile_start + tile_elems > n_valid
    nsub = tile_rows // SUBLANES

    @pl.when(jnp.logical_not(needs_mask))
    def _():
        # Fully-valid tile: fold (tile_rows,128) into the (8,128) accumulator
        # with pure vreg-wise VALU adds (no mask, no cross-lane work).
        acc_ref[...] += jnp.sum(elem.reshape(nsub, SUBLANES, LANES), axis=0)

    @pl.when(needs_mask)
    def _():
        # Ragged / phantom tile: select-out (NOT multiply-out) the invalid tail
        # -- out-of-bounds VMEM may contain Inf/NaN and a select does not
        # propagate the unselected value.
        row = jax.lax.broadcasted_iota(jnp.int32, (tile_rows, LANES), 0)
        col = jax.lax.broadcasted_iota(jnp.int32, (tile_rows, LANES), 1)
        gidx = tile_start + row * LANES + col
        masked = jnp.where(gidx < n_valid, elem, 0.0)
        acc_ref[...] += jnp.sum(masked.reshape(nsub, SUBLANES, LANES), axis=0)

    @pl.when(i == nsteps - 1)
    def _():
        # One small cross-lane reduction per split; each parallel slice owns its
        # own output element (required for the megacore split to be correct).
        out_ref[0, 0] = jnp.sum(acc_ref[...])


def focal_loss(inputs, targets, gamma=0.0, eps=1e-7):
    """Pallas implementation of FocalLoss.forward (gamma defaults to 0 like the module)."""
    del eps  # unused in the PyTorch forward as well
    assert inputs.shape == targets.shape

    # Keep original floating dtype in HBM (less DMA traffic); cast in-kernel.
    if jnp.issubdtype(inputs.dtype, jnp.floating):
        x = inputs
    else:
        x = inputs.astype(jnp.float32)
    if jnp.issubdtype(targets.dtype, jnp.floating):
        t = targets
    elif targets.dtype == jnp.bool_:
        t = targets.astype(jnp.bfloat16)   # 0/1 labels: exact in bf16, half the bytes
    else:
        t = targets.astype(jnp.float32)

    x = x.reshape(-1)
    t = t.reshape(-1)
    n_valid = x.shape[0]

    # Pad only to a multiple of LANES (needed to view as (rows, 128)); skipped
    # entirely in the common case n % 128 == 0, so no extra HBM copies.
    n_pad = (-n_valid) % LANES
    if n_pad:
        x = jnp.pad(x, (0, n_pad))
        t = jnp.pad(t, (0, n_pad))
    rows = (n_valid + n_pad) // LANES

    x2 = x.reshape(rows, LANES)
    t2 = t.reshape(rows, LANES)

    # Block rows: as large as possible (<= MAX_TILE_ROWS), multiple of 8.
    tile_rows = min(MAX_TILE_ROWS, _round_up(rows, SUBLANES))
    num_tiles = pl.cdiv(rows, tile_rows)
    nsplit = NUM_SPLITS if num_tiles >= NUM_SPLITS else 1
    tiles_per_split = pl.cdiv(num_tiles, nsplit)

    def in_map(c, i):
        # Clamp so "phantom" tiles (when nsplit*tiles_per_split > num_tiles)
        # re-read the last real tile; the in-kernel mask zeroes their contribution.
        tile = jnp.minimum(c * tiles_per_split + i, num_tiles - 1)
        return (tile, 0)

    kernel = functools.partial(
        _bce_sum_kernel,
        n_valid=n_valid, tile_rows=tile_rows, tiles_per_split=tiles_per_split)

    partial_sums = pl.pallas_call(
        kernel,
        out_shape=jax.ShapeDtypeStruct((nsplit, 1), jnp.float32),
        grid_spec=pltpu.PrefetchScalarGridSpec(
            num_scalar_prefetch=0,
            grid=(nsplit, tiles_per_split),
            in_specs=[
                pl.BlockSpec((tile_rows, LANES), in_map),
                pl.BlockSpec((tile_rows, LANES), in_map),
            ],
            out_specs=pl.BlockSpec((1, 1), lambda c, i: (c, 0),
                                   memory_space=pltpu.SMEM),
            scratch_shapes=[pltpu.VMEM((SUBLANES, LANES), jnp.float32)],
        ),
        compiler_params=pltpu.CompilerParams(
            dimension_semantics=("parallel", "arbitrary"),
            vmem_limit_bytes=VMEM_LIMIT_BYTES,
        ),
        cost_estimate=pl.CostEstimate(
            flops=6 * n_valid,
            transcendentals=2 * n_valid,
            bytes_accessed=(x2.dtype.itemsize * x2.size
                            + t2.dtype.itemsize * t2.size),
        ),
    )(x2, t2)

    logp = jnp.sum(partial_sums) / jnp.float32(n_valid)  # BCE mean reduction
    p = jnp.exp(-logp)
    loss = (1.0 - p) ** gamma * logp
    return loss  # scalar; .mean() of a scalar is the scalar itself


def _focal_loss_ref(inputs, targets, gamma=0.0):
    x = inputs.astype(jnp.float32)
    t = targets.astype(jnp.float32)
    elem = jnp.maximum(x, 0.0) - x * t + jnp.log1p(jnp.exp(-jnp.abs(x)))
    logp = jnp.mean(elem)
    p = jnp.exp(-logp)
    return (1.0 - p) ** gamma * logp


if __name__ == "__main__":
    key = jax.random.PRNGKey(0)
    k1, k2, k3, k4 = jax.random.split(key, 4)

    # Shapes consistent with a segmentation-style use of BCEWithLogitsLoss (NCHW).
    B, C, H, W = 2, 4, 16, 16
    inputs = jax.random.normal(k1, (B, C, H, W), dtype=jnp.float32)
    # 0/1 labels are exact in bf16 -> exercises the reduced-HBM-traffic path.
    targets = (jax.random.uniform(k2, (B, C, H, W)) > 0.5).astype(jnp.bfloat16)

    gamma = 2.0  # hyperparameter (module default is 0; forward formula identical)

    out = jax.block_until_ready(focal_loss(inputs, targets, gamma=gamma))
    ref = _focal_loss_ref(inputs, targets, gamma=gamma)
    assert jnp.allclose(out, ref, rtol=1e-5, atol=1e-6), (out, ref)

    # Secondary sanity check (still small): a ragged size that exercises the
    # 2-way megacore split, the phantom tile and the masked tail.
    big_shape = (2, 13, 181, 229)   # 1,077,674 elements -> 3 tiles of 4096 rows
    big_in = jax.random.normal(k3, big_shape, dtype=jnp.float32)
    big_tg = (jax.random.uniform(k4, big_shape) > 0.5).astype(jnp.bfloat16)
    out2 = jax.block_until_ready(focal_loss(big_in, big_tg, gamma=gamma))
    ref2 = _focal_loss_ref(big_in, big_tg, gamma=gamma)
    assert jnp.allclose(out2, ref2, rtol=1e-4, atol=1e-6), (out2, ref2)

    print("KERNEL_OK")
</pallas_src>

<mosaic_0001>
module attributes {stable_mosaic.version = 11 : i64} {
  func.func @_bce_sum_kernel(%arg0: i32, %arg1: i32, %arg2: memref<16x128xf32, #tpu.memory_space<vmem>>, %arg3: memref<16x128xbf16, #tpu.memory_space<vmem>>, %arg4: memref<1x1xf32, #tpu.memory_space<smem>>, %arg5: memref<8x128xf32, #tpu.memory_space<vmem>>) attributes {dimension_semantics = [#tpu.dimension_semantics<parallel>, #tpu.dimension_semantics<arbitrary>], iteration_bounds = array<i64: 1, 1>, scalar_prefetch = 0 : i64, scratch_operands = 1 : i64, tpu.core_type = #tpu.core_type<tc>, window_params = [{transform_indices = @transform_0, window_bounds = array<i64: 16, 128>}, {transform_indices = @transform_1, window_bounds = array<i64: 16, 128>}, {transform_indices = @transform_2, window_bounds = array<i64: 1, 1>}]} {
    %c0_i32 = arith.constant 0 : i32
    %0 = arith.cmpi eq, %arg1, %c0_i32 : i32
    %1 = arith.extui %0 : i1 to i32
    %c0_i32_0 = arith.constant 0 : i32
    %2 = arith.cmpi ne, %1, %c0_i32_0 : i32
    scf.if %2 {
      %cst_11 = arith.constant 0.000000e+00 : f32
      %29 = vector.broadcast %cst_11 : f32 to vector<8x128xf32>
      %c0_12 = arith.constant 0 : index
      %c0_13 = arith.constant 0 : index
      %30 = vector.load %arg5[%c0_12, %c0_13] : memref<8x128xf32, #tpu.memory_space<vmem>>, vector<8x128xf32>
      tpu.vector_store %arg5[%c0_12, %c0_13], %29 {strides = array<i32>} : memref<8x128xf32, #tpu.memory_space<vmem>>, vector<8x128xf32>,
    } else {
    }
    %c0 = arith.constant 0 : index
    %c0_1 = arith.constant 0 : index
    %3 = vector.load %arg2[%c0, %c0_1] : memref<16x128xf32, #tpu.memory_space<vmem>>, vector<16x128xf32>
    %c0_2 = arith.constant 0 : index
    %c0_3 = arith.constant 0 : index
    %4 = vector.load %arg3[%c0_2, %c0_3] : memref<16x128xbf16, #tpu.memory_space<vmem>>, vector<16x128xbf16>
    %5 = arith.extf %4 : vector<16x128xbf16> to vector<16x128xf32>
    %cst = arith.constant 0.000000e+00 : f32
    %6 = vector.broadcast %cst : f32 to vector<16x128xf32>
    %7 = arith.maximumf %3, %6 : vector<16x128xf32>
    %8 = arith.mulf %3, %5 : vector<16x128xf32>
    %9 = arith.subf %7, %8 : vector<16x128xf32>
    %10 = math.absf %3 : vector<16x128xf32>
    %cst_4 = arith.constant 0.000000e+00 : f32
    %11 = vector.broadcast %cst_4 : f32 to vector<16x128xf32>
    %12 = arith.subf %11, %10 : vector<16x128xf32>
    %13 = math.exp %12 : vector<16x128xf32>
    %14 = math.log1p %13 : vector<16x128xf32>
    %15 = arith.addf %9, %14 : vector<16x128xf32>
    %c1_i32 = arith.constant 1 : i32
    %16 = arith.muli %arg0, %c1_i32 : i32
    %17 = arith.addi %16, %arg1 : i32
    %c2048_i32 = arith.constant 2048 : i32
    %18 = arith.muli %17, %c2048_i32 : i32
    %c2048_i32_5 = arith.constant 2048 : i32
    %19 = arith.addi %18, %c2048_i32_5 : i32
    %c2048_i32_6 = arith.constant 2048 : i32
    %20 = arith.cmpi sgt, %19, %c2048_i32_6 : i32
    %true = arith.constant true
    %21 = arith.xori %20, %true : i1
    %22 = arith.extui %21 : i1 to i32
    %c0_i32_7 = arith.constant 0 : i32
    %23 = arith.cmpi ne, %22, %c0_i32_7 : i32
    scf.if %23 {
      %c0_11 = arith.constant 0 : index
      %c0_12 = arith.constant 0 : index
      %29 = vector.load %arg5[%c0_11, %c0_12] : memref<8x128xf32, #tpu.memory_space<vmem>>, vector<8x128xf32>
      %30 = vector.shape_cast %15 : vector<16x128xf32> to vector<2x8x128xf32>
      %cst_13 = arith.constant dense<0.000000e+00> : vector<8x128xf32>
      %31 = vector.multi_reduction <add>, %30, %cst_13 [0] : vector<2x8x128xf32> to vector<8x128xf32>
      %32 = arith.addf %29, %31 : vector<8x128xf32>
      %c0_14 = arith.constant 0 : index
      %c0_15 = arith.constant 0 : index
      %33 = vector.load %arg5[%c0_14, %c0_15] : memref<8x128xf32, #tpu.memory_space<vmem>>, vector<8x128xf32>
      tpu.vector_store %arg5[%c0_14, %c0_15], %32 {strides = array<i32>} : memref<8x128xf32, #tpu.memory_space<vmem>>, vector<8x128xf32>,
    } else {
    }
    %24 = arith.extui %20 : i1 to i32
    %c0_i32_8 = arith.constant 0 : i32
    %25 = arith.cmpi ne, %24, %c0_i32_8 : i32
    scf.if %25 {
      %29 = tpu.iota {dimensions = array<i32: 0>} : vector<16x128xi32>
      %30 = tpu.iota {dimensions = array<i32: 1>} : vector<16x128xi32>
      %c128_i32 = arith.constant 128 : i32
      %31 = vector.broadcast %c128_i32 : i32 to vector<16x128xi32>
      %32 = arith.muli %29, %31 : vector<16x128xi32>
      %33 = vector.broadcast %18 : i32 to vector<16x128xi32>
      %34 = arith.addi %33, %32 : vector<16x128xi32>
      %35 = arith.addi %34, %30 : vector<16x128xi32>
      %c2048_i32_11 = arith.constant 2048 : i32
      %36 = vector.broadcast %c2048_i32_11 : i32 to vector<16x128xi32>
      %37 = arith.cmpi slt, %35, %36 : vector<16x128xi32>
      %cst_12 = arith.constant 0.000000e+00 : f32
      %38 = vector.broadcast %cst_12 : f32 to vector<16x128xf32>
      %39 = arith.select %37, %15, %38 : vector<16x128xi1>, vector<16x128xf32>
      %c0_13 = arith.constant 0 : index
      %c0_14 = arith.constant 0 : index
      %40 = vector.load %arg5[%c0_13, %c0_14] : memref<8x128xf32, #tpu.memory_space<vmem>>, vector<8x128xf32>
      %41 = vector.shape_cast %39 : vector<16x128xf32> to vector<2x8x128xf32>
      %cst_15 = arith.constant dense<0.000000e+00> : vector<8x128xf32>
      %42 = vector.multi_reduction <add>, %41, %cst_15 [0] : vector<2x8x128xf32> to vector<8x128xf32>
      %43 = arith.addf %40, %42 : vector<8x128xf32>
      %c0_16 = arith.constant 0 : index
      %c0_17 = arith.constant 0 : index
      %44 = vector.load %arg5[%c0_16, %c0_17] : memref<8x128xf32, #tpu.memory_space<vmem>>, vector<8x128xf32>
      tpu.vector_store %arg5[%c0_16, %c0_17], %43 {strides = array<i32>} : memref<8x128xf32, #tpu.memory_space<vmem>>, vector<8x128xf32>,
    } else {
    }
    %c0_i32_9 = arith.constant 0 : i32
    %26 = arith.cmpi eq, %arg1, %c0_i32_9 : i32
    %27 = arith.extui %26 : i1 to i32
    %c0_i32_10 = arith.constant 0 : i32
    %28 = arith.cmpi ne, %27, %c0_i32_10 : i32
    scf.if %28 {
      %c0_11 = arith.constant 0 : index
      %c0_12 = arith.constant 0 : index
      %29 = vector.load %arg5[%c0_11, %c0_12] : memref<8x128xf32, #tpu.memory_space<vmem>>, vector<8x128xf32>
      %30 = vector.shape_cast %29 : vector<8x128xf32> to vector<1x8x128xf32>
      %cst_13 = arith.constant dense<0.000000e+00> : vector<1xf32>
      %31 = vector.multi_reduction <add>, %30, %cst_13 [1, 2] : vector<1x8x128xf32> to vector<1xf32>
      %32 = vector.shape_cast %31 : vector<1xf32> to vector<1x1x1xf32>
      %33 = vector.extract %32[0, 0, 0] : f32 from vector<1x1x1xf32>
      %c0_14 = arith.constant 0 : index
      %c0_15 = arith.constant 0 : index
      %34 = memref.load %arg4[%c0_14, %c0_15] : memref<1x1xf32, #tpu.memory_space<smem>>
      memref.store %33, %arg4[%c0_14, %c0_15] : memref<1x1xf32, #tpu.memory_space<smem>>
    } else {
    }
    return
  }
  func.func @transform_0(%arg0: i32, %arg1: i32) -> (i32, i32) {
    %c1_i32 = arith.constant 1 : i32
    %0 = arith.muli %arg0, %c1_i32 : i32
    %1 = arith.addi %0, %arg1 : i32
    %c0_i32 = arith.constant 0 : i32
    %2 = arith.minsi %1, %c0_i32 : i32
    %c0_i32_0 = arith.constant 0 : i32
    %c0_i32_1 = arith.constant 0 : i32
    return %2, %c0_i32_0 : i32, i32
  }
  func.func @transform_1(%arg0: i32, %arg1: i32) -> (i32, i32) {
    %c1_i32 = arith.constant 1 : i32
    %0 = arith.muli %arg0, %c1_i32 : i32
    %1 = arith.addi %0, %arg1 : i32
    %c0_i32 = arith.constant 0 : i32
    %2 = arith.minsi %1, %c0_i32 : i32
    %c0_i32_0 = arith.constant 0 : i32
    %c0_i32_1 = arith.constant 0 : i32
    return %2, %c0_i32_0 : i32, i32
  }
  func.func @transform_2(%arg0: i32, %arg1: i32) -> (i32, i32) {
    %c0_i32 = arith.constant 0 : i32
    %c0_i32_0 = arith.constant 0 : i32
    return %arg0, %c0_i32 : i32, i32
  }
}

</mosaic_0001>

<bundles_post_ra>
// kernel: tpu_custom_call.1
= control target key start
LH: loop header
LB: loop body
LE: loop exit
PB: predicated region body
PF: predicated region fallthrough
CT: control target
= control target key end

     0   :  { %7 = vsyncpa [#allocation4], 0  ;;  %s313_s0 = inlined_call_operand.hbm [shape: f32[16,128], index: 0, kind: input, shape index: {}]   ;;  %s314_s1 = inlined_call_operand.hbm [shape: bf16[16,128], index: 1, kind: input, shape index: {}]   ;;  %s315_s2 = inlined_call_operand.hbm [shape: f32[1,1], index: 2, kind: output, shape index: {}]  }
   0x1   :  { %8 = vsyncpa [#allocation7], 0 }
   0x2   :  { %9 = vsyncpa [#allocation5], 0  ;;  %s255_s9 = smov [#allocation3]   ;;  %s195_s13 = scalar_lea.hbm %s313_s0, 256 }
   0x3   :  { %s21_s10 = sshll.u32 %s255_s9, 4  ;;  %p196_p0 = scmp.ne.s32.totalorder %s313_s0, %s195_s13  ;;  %s22_s10 = int_to_ptr.vmem [resolvable:$true] %s21_s10 }
   0x4   :  { %p199_p1 = scmp.lt.u32.totalorder %s195_s13, %s313_s0 }
   0x6   :  { %p201_p2 = pnand %p199_p1, %p196_p0 }
   0x8   :  { %204 = shalt.err (!%p201_p2)
}
   0x9   :  { %s205_s18 = scalar_lea.vmem %s22_s10, 256  ;;  %p210_p4 = scmp.lt.s32.totalorder %s22_s10, %s22_s10 }
   0xa   :  { %p206_p3 = scmp.ne.s32.totalorder %s22_s10, %s205_s18  ;;  %p211_p5 = scmp.lt.s32.totalorder %s205_s18, %s205_s18 }
   0xc   :  { %p212_p6 = por %p211_p5, %p210_p4 }
   0xe   :  { %p213_p7 = pnand %p212_p6, %p206_p3 }
  0x10   :  { %216 = shalt.err (!%p213_p7)
}
  0x11   :  { %s256_s19 = smov 128   ;;  %s257_s20 = smov 8  }
  0x12   :  { %27 = dma.hbm_to_vmem [thread:$0]  %s313_s0, 256, %s22_s10, [#allocation4], %s256_s19, %s256_s19, %s257_s20  }
  0x13   :  { %s258_s23 = smov [#allocation6]   ;;  %s217_s27 = scalar_lea.hbm %s314_s1, 128 }
  0x14   :  { %s39_s24 = sshll.u32 %s258_s23, 4  ;;  %p218_p8 = scmp.ne.s32.totalorder %s314_s1, %s217_s27  ;;  %s40_s24 = int_to_ptr.vmem [resolvable:$true] %s39_s24 }
  0x15   :  { %p221_p9 = scmp.lt.u32.totalorder %s217_s27, %s314_s1 }
  0x17   :  { %p223_p10 = pnand %p221_p9, %p218_p8 }
  0x19   :  { %226 = shalt.err (!%p223_p10)
}
  0x1a   :  { %s227_s4 = scalar_lea.vmem %s40_s24, 128  ;;  %p232_p12 = scmp.lt.s32.totalorder %s40_s24, %s40_s24 }
  0x1b   :  { %p228_p11 = scmp.ne.s32.totalorder %s40_s24, %s227_s4  ;;  %p233_p13 = scmp.lt.s32.totalorder %s227_s4, %s227_s4 }
  0x1d   :  { %p234_p0 = por %p233_p13, %p232_p12 }
  0x1f   :  { %p235_p1 = pnand %p234_p0, %p228_p11 }
  0x21   :  { %238 = shalt.err (!%p235_p1)
}
  0x22   :  { %s259_s0 = smov 64   ;;  %s260_s5 = smov 4  }
  0x23   :  { %45 = dma.hbm_to_vmem [thread:$0]  %s314_s1, 128, %s40_s24, [#allocation7], %s259_s0, %s259_s0, %s260_s5  }
  0x24   :  { %249 = dma.done.wait [#allocation4], 256  }
  0x25   :  { %250 = vsyncadd [#allocation4], 4294967040 }
  0x26   :  { %251 = dma.done.wait [#allocation7], 128  }
  0x27   :  { %252 = vsyncadd [#allocation7], 4294967168  ;;  %v65_v0 = vld [vmem:[#allocation3] sm:$0xff]  ;;  %v66_v1 = vld [vmem:[#allocation3 + $0x8] sm:$0xff]  ;;  %s239_s10 = scalar_lea.hbm %s315_s2, 16 }
  0x28   :  { %v77_v2 = vand.u32 2147483647, %v65_v0  ;;  %v78_v3 = vand.u32 2147483647, %v66_v1  ;;  %v175_v11 = vld [vmem:[#allocation6] sm:$0xff]   ;;  %v71_v18 = vmax.f32 %v65_v0, 0.0  ;;  %p240_p2 = scmp.ne.s32.totalorder %s315_s2, %s239_s10  ;;  %p243_p3 = scmp.lt.u32.totalorder %s239_s10, %s315_s2 }
  0x29   :  { %v176_v14 = vunpack.c.l.bf16 %v175_v11  ;;  %v177_v16 = vunpack.c.h.bf16 %v175_v11  ;;  %v72_v22 = vmax.f32 %v66_v1, 0.0 }
  0x2a   :  { %v79_v4 = vsub.f32 0.0, %v77_v2  ;;  %v80_v5 = vsub.f32 0.0, %v78_v3  ;;  %p245_p4 = pnand %p243_p3, %p240_p2 }
  0x2b   :  { %v73_v19 = vmul.f32 %v176_v14, %v65_v0  ;;  %v74_v23 = vmul.f32 %v177_v16, %v66_v1 }
  0x2c   :  { %v81_v6 = vmul.f32 1.442695, %v79_v4  ;;  %v83_v7 = vmul.f32 1.442695, %v80_v5 }
  0x2d   :  { %v75_v27 = vsub.f32 %v71_v18, %v73_v19  ;;  %v76_v30 = vsub.f32 %v72_v22, %v74_v23 }
  0x2e   :  { %187 = vpow2.f32 %v81_v6 }
  0x2f   :  { %189 = vpow2.f32 %v83_v7 }
  0x38   :  { %v188_v8 = vpop.eup %187 }
  0x39   :  { %v190_v9 = vpop.eup %189  ;;  %v85_v10 = vadd.f32 1.0, %v188_v8  ;;  %v88_v13 = vmul.f32 -0.5, %v188_v8  ;;  %v91_v20 = vand.u32 2147483647, %v188_v8 }
  0x3a   :  { %v94_v12 = vadd.f32 1.0, %v190_v9  ;;  %v97_v15 = vmul.f32 -0.5, %v190_v9  ;;  %v100_v24 = vand.u32 2147483647, %v190_v9 }
  0x3b   :  { %191 = vlog2.f32 %v85_v10  ;;  %v89_v17 = vadd.f32 1.0, %v88_v13  ;;  %vm92_vm0 = vcmp.lt.f32.partialorder %v91_v20, 0.0004427343 }
  0x3c   :  { %193 = vlog2.f32 %v94_v12  ;;  %v98_v21 = vadd.f32 1.0, %v97_v15  ;;  %vm101_vm1 = vcmp.lt.f32.partialorder %v100_v24, 0.0004427343 }
  0x3d   :  { %v90_v25 = vmul.f32 %v188_v8, %v89_v17 }
  0x3e   :  { %v99_v28 = vmul.f32 %v190_v9, %v98_v21 }
  0x45   :  { %v192_v26 = vpop.eup %191 }
  0x46   :  { %v194_v29 = vpop.eup %193  ;;  %v87_v31 = vmul.f32 0.6931472, %v192_v26 }
  0x47   :  { %v96_v32 = vmul.f32 0.6931472, %v194_v29 }
  0x48   :  { %v93_v33 = vsel %vm92_vm0, %v90_v25, %v87_v31 }
  0x49   :  { %v102_v34 = vsel %vm101_vm1, %v99_v28, %v96_v32  ;;  %v103_v35 = vadd.f32 %v93_v33, %v75_v27 }
  0x4a   :  { %v104_v36 = vadd.f32 %v102_v34, %v76_v30 }
  0x4c   :  { %v114_v37 = vadd.f32 %v104_v36, %v103_v35 }
  0x4e   :  { %144 = vadd.xlane.f32.xlu0 %v114_v37 }
  0xdb   :  { %v145_v38 = vpop.xlane.xlu0 %144 }
  0xdc   :  { %v146_v39 = vrot.slane %v145_v38, 4 }
  0xde   :  { %v147_v40 = vadd.f32 %v146_v39, %v145_v38 }
  0xe0   :  { %v148_v41 = vrot.slane %v147_v40, 2 }
  0xe2   :  { %v149_v42 = vadd.f32 %v148_v41, %v147_v40 }
  0xe4   :  { %v150_v43 = vrot.slane %v149_v42, 1 }
  0xe6   :  { %v151_v44 = vadd.f32 %v150_v43, %v149_v42 }
  0xe8   :  { %178 = vpush %v151_v44 }
 0x119   :  { %s179_s1 = spop %178 }
 0x11a   :  { %154 = sst [smem:[#allocation8]] %s179_s1 }
 0x11b   :  { %248 = shalt.err (!%p245_p4)
}
 0x11c   :  { %s261_s15 = smov [#allocation8]  }
 0x11d   :  { %162 = dma.smem_to_hbm %s261_s15, 16, %s315_s2, [#allocation5]  }
 0x11e   :  { %253 = dma.done.wait [#allocation5], 16  }
 0x11f   :  { %254 = vsyncadd [#allocation5], 4294967280 }
 0x120   :  { %166 = sfence }
 0x121   :  { %167 = vsyncpa [#allocation4], 1 }
 0x122   :  { %168 = vsyncpa [#allocation7], 1 }
 0x123   :  { %169 = vsyncpa [#allocation5], 1 }

</bundles_post_ra>
